<compile_context>
chip_gen: v7x
topology: tpu7x:2x2x1
jax: 0.10.0
libtpu: 0.0.40
codegen_flags: <defaults>
</compile_context>

<pallas_src>
import jax
import jax.numpy as jnp
from jax.experimental import pallas as pl
from jax.experimental.pallas import tpu as pltpu


def _bcast_add_kernel(dec_ref, enc_ref, out_ref):
    # dec_ref: (TD, 1)   enc_ref: (1, TE)   out_ref: (TD, TE)
    out_ref[...] = (dec_ref[...] + enc_ref[...]).astype(out_ref.dtype)


def _round_up(x, m):
    return ((x + m - 1) // m) * m


def _pick_tile(dim, cap, align):
    """Full dim if it fits the cap (full-extent blocks are exempt from the
    (8,128) rule); otherwise the fewest near-equal, `align`-aligned chunks
    <= cap so every step stays lane/sublane dense (no tiny trailing tile)."""
    if dim <= cap:
        return dim
    n_blocks = pl.cdiv(dim, cap)
    return _round_up(pl.cdiv(dim, n_blocks), align)


def _shrink_tile(dim, tile, align):
    """A smaller valid (aligned, < current) tile for `dim`, or None."""
    n_blocks = pl.cdiv(dim, tile) * 2
    new = _round_up(pl.cdiv(dim, n_blocks), align)
    if new < align or new >= tile:
        return None
    return new


def concat_attention(decoder_states, encoder_states, weight, bias,
                     out_dtype=None):
    """
    decoder_states: (B, D, H) float32
    encoder_states: (B, E, H) float32
    weight:         (1, 2H)   float32  (PyTorch nn.Linear weight layout)
    bias:           (1,)      float32
    returns:        (B, D, E) out_dtype (default: decoder_states.dtype)
    """
    B, D, H = decoder_states.shape
    _, E, _ = encoder_states.shape
    out_dtype = decoder_states.dtype if out_dtype is None else out_dtype

    # Weight split matches torch.cat((encoder, decoder), dim=1).
    w_enc = weight[0, :H]
    w_dec = weight[0, H:]

    # Tiny matvecs stay in XLA (an N=1 MXU matmul wastes >99% of the array);
    # bias is folded into the decoder score so the kernel has no scalar operand.
    dec_score = jnp.einsum("bdh,h->bd", decoder_states, w_dec,
                           preferred_element_type=jnp.float32) + bias[0]
    enc_score = jnp.einsum("beh,h->be", encoder_states, w_enc,
                           preferred_element_type=jnp.float32)
    dec_score = dec_score.reshape(B, D, 1).astype(jnp.float32)
    enc_score = enc_score.reshape(B, 1, E).astype(jnp.float32)

    # Lane-dense output tiles: TE multiple of 128 (cap 4096), TD multiple of 8
    # (cap 512) -> ~8 MiB f32 per tile, ~16 MiB double-buffered.
    TD = _pick_tile(D, 512, 8)
    TE = _pick_tile(E, 4096, 128)

    # Minimum-step guard: keep >= 4 grid steps (v7x megacore balance + keep
    # the last writeback pipelined).  Only back off when a smaller aligned
    # tile is actually legal.
    MIN_STEPS = 4
    steps = B * pl.cdiv(D, TD) * pl.cdiv(E, TE)
    while steps < MIN_STEPS:
        cand_e = _shrink_tile(E, TE, 128)
        cand_d = _shrink_tile(D, TD, 8)
        if cand_e is not None and (cand_d is None or TE >= TD):
            TE = cand_e
        elif cand_d is not None:
            TD = cand_d
        else:
            break
        steps = B * pl.cdiv(D, TD) * pl.cdiv(E, TE)

    grid = (B, pl.cdiv(D, TD), pl.cdiv(E, TE))

    out_bytes = jnp.dtype(out_dtype).itemsize
    cost = pl.CostEstimate(
        flops=B * D * E,
        transcendentals=0,
        bytes_accessed=out_bytes * B * D * E + 4 * (B * D + B * E),
    )

    return pl.pallas_call(
        _bcast_add_kernel,
        out_shape=jax.ShapeDtypeStruct((B, D, E), out_dtype),
        grid_spec=pltpu.PrefetchScalarGridSpec(
            num_scalar_prefetch=0,
            grid=grid,
            in_specs=[
                # Leading batch dim squeezed -> 2-D kernel refs.
                pl.BlockSpec((None, TD, 1), lambda b, i, j: (b, i, 0)),   # dec
                pl.BlockSpec((None, 1, TE), lambda b, i, j: (b, 0, j)),   # enc
            ],
            out_specs=pl.BlockSpec((None, TD, TE), lambda b, i, j: (b, i, j)),
        ),
        compiler_params=pltpu.CompilerParams(
            dimension_semantics=("parallel", "parallel", "parallel"),
            vmem_limit_bytes=32 * 1024 * 1024,
        ),
        cost_estimate=cost,
    )(dec_score, enc_score)
    # TODO(synk): fusing the downstream softmax/context matmul would avoid the
    # full (B, D, E) HBM round-trip entirely; out of scope for this module.


concat_attention = jax.jit(concat_attention, static_argnames=("out_dtype",))


def _reference(decoder_states, encoder_states, weight, bias):
    B, E, H = encoder_states.shape
    _, D, _ = decoder_states.shape
    enc_exp = jnp.broadcast_to(encoder_states[:, None, :, :], (B, D, E, H))
    dec_exp = jnp.broadcast_to(decoder_states[:, :, None, :], (B, D, E, H))
    mlp_in = jnp.concatenate(
        [enc_exp.reshape(-1, H), dec_exp.reshape(-1, H)], axis=1)   # (B*D*E, 2H)
    mlp_out = mlp_in @ weight.T + bias                              # (B*D*E, 1)
    return mlp_out.reshape(B, D, E)


if __name__ == "__main__":
    key = jax.random.PRNGKey(0)
    k_dec, k_enc, k_w, k_b = jax.random.split(key, 4)

    batch, dec_seqlen, enc_seqlen, hidden = 2, 8, 16, 32

    decoder_states = jax.random.normal(k_dec, (batch, dec_seqlen, hidden),
                                       dtype=jnp.float32)
    encoder_states = jax.random.normal(k_enc, (batch, enc_seqlen, hidden),
                                       dtype=jnp.float32)

    # nn.Linear(2*hidden, 1) parameters, deterministic init.
    bound = 1.0 / jnp.sqrt(2.0 * hidden)
    weight = jax.random.uniform(k_w, (1, 2 * hidden), minval=-bound,
                                maxval=bound, dtype=jnp.float32)
    bias = jax.random.uniform(k_b, (1,), minval=-bound, maxval=bound,
                              dtype=jnp.float32)

    attn = concat_attention(decoder_states, encoder_states, weight, bias)
    attn = jax.block_until_ready(attn)

    ref = _reference(decoder_states, encoder_states, weight, bias)
    assert attn.shape == (batch, dec_seqlen, enc_seqlen)
    assert jnp.allclose(attn, ref, atol=1e-5, rtol=1e-5), "mismatch vs reference"

    print("KERNEL_OK")
</pallas_src>

<mosaic_0001>
module attributes {stable_mosaic.version = 11 : i64} {
  func.func @_bcast_add_kernel(%arg0: i32, %arg1: i32, %arg2: i32, %arg3: memref<1x8x1xf32, #tpu.memory_space<vmem>>, %arg4: memref<1x1x16xf32, #tpu.memory_space<vmem>>, %arg5: memref<1x8x16xf32, #tpu.memory_space<vmem>>) attributes {dimension_semantics = [#tpu.dimension_semantics<parallel>, #tpu.dimension_semantics<parallel>, #tpu.dimension_semantics<parallel>], iteration_bounds = array<i64: 2, 1, 1>, scalar_prefetch = 0 : i64, scratch_operands = 0 : i64, tpu.core_type = #tpu.core_type<tc>, window_params = [{transform_indices = @transform_0, window_bounds = array<i64: 1, 8, 1>}, {transform_indices = @transform_1, window_bounds = array<i64: 1, 1, 16>}, {transform_indices = @transform_2, window_bounds = array<i64: 1, 8, 16>}]} {
    %c0 = arith.constant 0 : index
    %c0_0 = arith.constant 0 : index
    %c0_1 = arith.constant 0 : index
    %0 = vector.load %arg3[%c0, %c0_0, %c0_1] : memref<1x8x1xf32, #tpu.memory_space<vmem>>, vector<1x8x1xf32>
    %1 = vector.shape_cast %0 : vector<1x8x1xf32> to vector<8x1xf32>
    %c0_2 = arith.constant 0 : index
    %c0_3 = arith.constant 0 : index
    %c0_4 = arith.constant 0 : index
    %2 = vector.load %arg4[%c0_2, %c0_3, %c0_4] : memref<1x1x16xf32, #tpu.memory_space<vmem>>, vector<1x1x16xf32>
    %3 = vector.shape_cast %2 : vector<1x1x16xf32> to vector<1x16xf32>
    %4 = vector.broadcast %1 : vector<8x1xf32> to vector<8x16xf32>
    %5 = vector.broadcast %3 : vector<1x16xf32> to vector<8x16xf32>
    %6 = arith.addf %4, %5 : vector<8x16xf32>
    %c0_5 = arith.constant 0 : index
    %c0_6 = arith.constant 0 : index
    %c0_7 = arith.constant 0 : index
    %7 = vector.load %arg5[%c0_5, %c0_6, %c0_7] : memref<1x8x16xf32, #tpu.memory_space<vmem>>, vector<1x8x16xf32>
    %8 = vector.shape_cast %7 : vector<1x8x16xf32> to vector<8x16xf32>
    %9 = vector.shape_cast %6 : vector<8x16xf32> to vector<1x8x16xf32>
    tpu.vector_store %arg5[%c0_5, %c0_6, %c0_7], %9 {strides = array<i32>} : memref<1x8x16xf32, #tpu.memory_space<vmem>>, vector<1x8x16xf32>,
    return
  }
  func.func @transform_0(%arg0: i32, %arg1: i32, %arg2: i32) -> (i32, i32, i32) {
    %c0_i32 = arith.constant 0 : i32
    %c0_i32_0 = arith.constant 0 : i32
    return %arg0, %arg1, %c0_i32 : i32, i32, i32
  }
  func.func @transform_1(%arg0: i32, %arg1: i32, %arg2: i32) -> (i32, i32, i32) {
    %c0_i32 = arith.constant 0 : i32
    %c0_i32_0 = arith.constant 0 : i32
    return %arg0, %c0_i32, %arg2 : i32, i32, i32
  }
  func.func @transform_2(%arg0: i32, %arg1: i32, %arg2: i32) -> (i32, i32, i32) {
    %c0_i32 = arith.constant 0 : i32
    return %arg0, %arg1, %arg2 : i32, i32, i32
  }
}

</mosaic_0001>

<bundles_post_ra>
// kernel: concat_attention.1
= control target key start
LH: loop header
LB: loop body
LE: loop exit
PB: predicated region body
PF: predicated region fallthrough
CT: control target
= control target key end

     0   :  { %7 = vsyncpa [#allocation3], 0  ;;  %s598_s0 = inlined_call_operand.vmem [shape: f32[2,8,1], index: 0, kind: input, shape index: {}]   ;;  %s599_s1 = inlined_call_operand.vmem [shape: f32[2,1,16], index: 1, kind: input, shape index: {}]   ;;  %s600_s2 = inlined_call_operand.hbm [shape: f32[2,8,16], index: 2, kind: output, shape index: {}]  }
   0x1   :  { %9 = vsyncpa [#allocation3 + $0x1], 0  ;;  %s483_s9 = smov 0   ;;  %s485_s10 = smov 0  }
   0x2   :  { %s487_s11 = smov 0   ;;  %s489_s12 = smov 0  }
   0x3   :  { %s491_s13 = smov 0   ;;  %s493_s14 = smov 0  }
   0x4 LB: > { %s317_s15 = sadd.s32 4294967295, %s464_s14   ;;  %s318_s16 = sadd.s32 4294967294, %s464_s14   ;;  %s464_s14 = sphi %s493_s14, %s15_s14   ;;  %s460_s13 = sphi %s491_s13, %s607_s13   ;;  %s456_s12 = sphi %s489_s12, %s606_s12   ;;  %s452_s11 = sphi %s487_s11, %s605_s11   ;;  %s448_s10 = sphi %s485_s10, %s604_s10   ;;  %s444_s9 = sphi %s483_s9, %s603_s9  }
   0x5   : > { %s34_s17 = sadd.s32 1, %s460_s13  ;;  %s101_s18 = sadd.s32 1, %s452_s11 }
   0x6   : > { %p36_p0 = scmp.ge.s32.totalorder %s34_s17, 2  ;;  %p111_p1 = scmp.ne.s32.totalorder %s452_s11, %s448_s10 }
   0x7   : > { %p112_p2 = scmp.eq.s32.totalorder %s317_s15, 1  ;;  %p117_p3 = scmp.ne.s32.totalorder %s448_s10, %s444_s9 }
   0x8   : > { %s609_s17 = smov (%p36_p0, %s34_s17), 0  ;;  %p118_p5 = scmp.eq.s32.totalorder %s318_s16, 1 }
   0x9   : > { %p523_p4 = por %p112_p2, %p111_p1  ;;  %s94_s20 = ssub.s32 %s460_s13, %s609_s17 }
   0xa   : > { %p321_p6 = scmp.ge.s32.totalorder %s464_s14, 1  ;;  %p99_p7 = scmp.eq.s32.totalorder %s94_s20, 0 }
   0xb   : > { %p530_p8 = por %p118_p5, %p117_p3  ;;  %p155_p9 = scmp.lt.s32.totalorder %s464_s14, 3 }
   0xc   : > { %s536_s22 = scalar_select %p99_p7, %s452_s11, %s101_s18  }
   0xd   : > { %p156_p10 = pnand %p321_p6, %p155_p9 }
   0xe   : > { %p185_p11 = scmp.lt.s32.totalorder (!%p156_p10), %s456_s12, 1  ;;  %v466_v0 = vmov (!%p156_p10), 0   ;;  %s182_s28 = sand.u32 (!%p156_p10), 1, %s448_s10   ;;  %vm212_vm0 = vcmask (!%p156_p10), 130048  }
   0xf   : > { %159 = sbr.rel (%p156_p10) target bundleno = 171 (0xab), region = 28  ;;  %385 = vset.pattern.permute.xlu0 (!%p156_p10), %v466_v0  ;;  %s322_s29 = sshll.u32 (!%p156_p10), %s182_s28, 3 }
  0x10   : > { %s326_s5 = sshll.u32 (!%p156_p10), %s456_s12, 7  ;;  %s184_s6 = scalar_lea.vmem (!%p156_p10), [#allocation2], %s322_s29 }
  0x11   : > { %s230_s7 = sshll.u32 (!%p156_p10), %s184_s6, 4  ;;  %s551_s16 = scalar_lea.hbm (!%p156_p10), %s600_s2, %s326_s5  ;;  %s553_s7 = int_to_ptr.vmem [resolvable:$true] %s230_s7 }
  0x12   : > { %s215_s18 = scalar_lea.sflag (!%p156_p10), [#allocation3], %s182_s28  ;;  %s386_s20 = scalar_lea.vmem (!%p156_p10), %s553_s7, 128 }
  0x13   : > { %p387_p12 = scmp.ne.s32.totalorder (!%p156_p10), %s553_s7, %s386_s20 }
  0x15   : > { %p388_p13 = pnand (!%p156_p10), %p387_p12, %p523_p4 }
  0x16   : > { %s186_s23 = scalar_select %p185_p11, %s456_s12, 1 }
  0x17   : > { %p389_p0 = pneg %p388_p13  ;;  %s467_s12 = smov [#allocation2]  }
  0x18   : > { %s323_s24 = sshll.u32 %s186_s23, 3  ;;  %s197_s4 = scalar_lea.vmem %s599_s1, %s186_s23 }
  0x19   : > { %s191_s27 = scalar_lea.vmem %s598_s0, %s323_s24  ;;  %v324_v2 = vld [vmem:[%s197_s4] ss:$0 sm:$0xff]  ;;  %s390_s23 = sshll.u32 %s467_s12, 4  ;;  %s391_s23 = int_to_ptr.vmem [resolvable:$false] %s390_s23 }
  0x1a   : > { %v198_v1 = vld [vmem:[%s191_s27] sm:$0xff]  ;;  %s392_s24 = scalar_lea.vmem %s391_s23, 256  ;;  %p393_p1 = scmp.lt.s32.totalorder %s553_s7, %s391_s23 }
  0x1b   : > { %202 = vperm.xlu0 %385, %v198_v1   ;;  %p394_p2 = scmp.lt.s32.totalorder %s392_s24, %s386_s20 }
  0x1d   : > { %p395_p3 = por %p394_p2, %p393_p1 }
  0x1f   : > { %p396_p5 = pnand %p395_p3, %p389_p0 }
  0x9a   : > { %v203_v3 = vpop.permute.xlu0 %202 }
  0x9b   : > { %v211_v4 = vadd.f32 %v324_v2, %v203_v3 }
  0x9d   : > { %213 = vst.msk [vmem:[%s184_s6] sm:$0xff] %vm212_vm0, %v211_v4 }
  0x9e   : > { %399 = shalt.err (!%p396_p5)
}
  0x9f   : > { %s400_s25 = scalar_lea.hbm %s551_s16, 128  ;;  %s404_s28 = scalar_lea.hbm %s600_s2, 256 }
  0xa0   : > { %p401_p6 = scmp.ne.s32.totalorder %s551_s16, %s400_s25  ;;  %p405_p10 = scmp.lt.u32.totalorder %s551_s16, %s600_s2 }
  0xa1   : > { %p406_p11 = scmp.lt.u32.totalorder %s404_s28, %s400_s25  ;;  %p408_p13 = scmp.lt.u32.totalorder %s400_s25, %s551_s16 }
  0xa2   : > { %p402_p7 = pnand %p401_p6, %p523_p4 }
  0xa3   : > { %p407_p12 = por %p406_p11, %p405_p10 }
  0xa4   : > { %p403_p9 = pneg %p402_p7 }
  0xa5   : > { %p409_p0 = por %p408_p13, %p407_p12 }
  0xa7   : > { %p410_p1 = pnand %p409_p0, %p403_p9 }
  0xa9   : > { %413 = shalt.err (!%p410_p1)
}
  0xaa   : > { %329 = dma.vmem_to_hbm [thread:$0]  (%p523_p4), %s553_s7, 128, %s551_s16, %s215_s18  }
  0xab PF: > { %p335_p2 = scmp.ge.s32.totalorder %s464_s14, 2  ;;  %s242_s3 = sand.u32 1, %s444_s9  }
  0xac   : > { %s243_s4 = scalar_lea.sflag [#allocation3], %s242_s3 }
  0xad   : > { %p332_p3 = pnand %p335_p2, %p530_p8 }
  0xaf   : > { %439 = dma.done.wait (!%p332_p3), %s243_s4, 128  }
  0xb0   : > { %441 = vsyncadd (!%p332_p3), %s243_s4, 4294967168  ;;  %s15_s14 = sadd.s32 1, %s464_s14   ;;  %s603_s9 = smov %s448_s10 }
  0xb1   : > { %p12_p5 = scmp.ge.s32.totalorder %s15_s14, 4   ;;  %s604_s10 = smov %s452_s11 }
  0xb2   : > { %s605_s11 = smov %s536_s22  ;;  %s606_s12 = smov %s460_s13 }
  0xb3   : > { %s607_s13 = smov %s609_s17  ;;  %14 = sbr.rel (!%p12_p5) target bundleno = 4 (0x4), region = 66 }
  0xba   :  { %248 = vsyncpa [#allocation3], 1 }
  0xbb   :  { %250 = vsyncpa [#allocation3 + $0x1], 1 }

</bundles_post_ra>
